<compile_context>
chip_gen: v6e
topology: v6e:2x2x1
jax: 0.10.0
libtpu: 0.0.40
codegen_flags: <defaults>
</compile_context>

<pallas_src>
import jax
import jax.numpy as jnp
from jax.experimental import pallas as pl
from jax.experimental.pallas import tpu as pltpu

_LANES = 128


# --------------------------------------------------------------------------
# Kernel
# --------------------------------------------------------------------------
def _make_smooth_l1_kernel(beta, compute_dtype):
    beta = float(beta)
    half_beta = 0.5 * beta
    inv_2beta = 0.5 / beta if beta > 0.0 else 0.0  # beta=0 degenerates to pure L1

    def kernel(pred_ref, target_ref, out_ref):
        # compute_dtype is f32 for f32 inputs (and for bf16 on v5e, which has
        # no bf16 VALU); it is bf16 on v6e/v7x so the kernel stays HBM-bound.
        p = pred_ref[...].astype(compute_dtype)
        t = target_ref[...].astype(compute_dtype)
        x = jnp.abs(p - t)
        l1 = x - half_beta
        # (x * inv_2beta) * x instead of x*x*inv_2beta: same op count, avoids
        # overflow in the discarded branch when beta is tiny and |x| is large.
        l2 = (x * inv_2beta) * x
        out_ref[...] = jnp.where(x >= beta, l1, l2).astype(out_ref.dtype)

    return kernel


# --------------------------------------------------------------------------
# Host-side helpers (shape / device heuristics, all plain Python)
# --------------------------------------------------------------------------
def _round_up(x, m):
    return ((x + m - 1) // m) * m


def _device_kind():
    try:
        return jax.devices()[0].device_kind.lower()
    except Exception:
        return ""


def _is_v5e(kind):
    return ("v5 lite" in kind) or ("v5lite" in kind) or ("v5e" in kind)


def _is_v6_or_newer(kind):
    return ("v6" in kind) or ("v7" in kind) or ("tpu7" in kind)


def _num_tensorcores(kind):
    # v7x packs 2 TensorCores per chip; v5e/v6e have 1.
    return 2 if (("v7" in kind) or ("tpu7" in kind)) else 1


def _default_block_bytes(kind):
    if _is_v6_or_newer(kind):
        # 3 arrays x 2 buffers x 4 MiB = 24 MiB, fits the 32 MiB scoped default
        # on v6e/v7x; bigger blocks would need vmem_limit_bytes.
        return 4 * 1024 * 1024
    # v5e (16 MiB scoped default) and unknown chips: 2 MiB blocks (12 MiB).
    return 2 * 1024 * 1024


def _sublane(dtype):
    # Native sublane packing: 8 rows for 4-byte dtypes, 16 for 2-byte, 32 for 1-byte.
    return max(8, 32 // jnp.dtype(dtype).itemsize)


def _compute_dtype(dtype, kind):
    if dtype == jnp.bfloat16 and _is_v6_or_newer(kind):
        return jnp.bfloat16  # native bf16 VALU on v6e/v7x
    return jnp.float32


def _pick_tile_rows(rows, max_tile_rows, sublane, num_cores):
    """Pick a block row count; the grid is cdiv(rows, tile_rows) (ragged last
    block handled by Pallas, so no row padding and no tiny-divisor cliff)."""
    cap = max(sublane, (max_tile_rows // sublane) * sublane)
    if rows <= cap:
        if num_cores >= 2 and rows >= 2 * sublane:
            # Split the single slab so both TensorCores get a block.
            return _round_up(pl.cdiv(rows, 2), sublane)
        # One block covering the whole slab (block dim == full array dim).
        return rows
    tile = cap
    if num_cores >= 2:
        g = pl.cdiv(rows, tile)
        if g % 2:
            # Shrink the tile slightly so the parallel grid is even and both
            # TensorCores finish together (only attempted on 2-TC chips).
            g_even = g + 1
            t2 = _round_up(pl.cdiv(rows, g_even), sublane)
            if sublane <= t2 <= cap and pl.cdiv(rows, t2) % 2 == 0:
                tile = t2
    return tile


# --------------------------------------------------------------------------
# Public wrapper
# --------------------------------------------------------------------------
def smooth_l1_loss(pred, target, beta=0.11, max_block_bytes=None):
    """Elementwise Smooth L1 loss (no reduction), matching the PyTorch module."""
    assert pred.shape == target.shape and pred.dtype == target.dtype
    orig_shape = pred.shape
    dtype = pred.dtype
    n = pred.size
    itemsize = jnp.dtype(dtype).itemsize

    kind = _device_kind()
    if max_block_bytes is None:
        max_block_bytes = _default_block_bytes(kind)
    num_cores = _num_tensorcores(kind)
    sublane = _sublane(dtype)
    compute_dtype = _compute_dtype(dtype, kind)

    p = jnp.ravel(pred)
    t = jnp.ravel(target)

    lane_pad = (-n) % _LANES
    if lane_pad:
        # Rare path (n % 128 != 0): pad with at most 127 elements so the slab
        # stays lane-dense. This does materialize a copy of each input; the
        # common 128-aligned case below is fully zero-copy.
        p = jnp.pad(p, (0, lane_pad))
        t = jnp.pad(t, (0, lane_pad))
    rows = (n + lane_pad) // _LANES

    max_tile_rows = max(sublane, max_block_bytes // (_LANES * itemsize))
    tile_rows = _pick_tile_rows(rows, max_tile_rows, sublane, num_cores)
    grid_rows = pl.cdiv(rows, tile_rows)

    p2 = p.reshape(rows, _LANES)
    t2 = t.reshape(rows, _LANES)

    # Memory-bound elementwise op: ~7 flops/elem, 2 reads + 1 write.
    cost = pl.CostEstimate(flops=7 * n, transcendentals=0,
                           bytes_accessed=3 * n * itemsize)

    out2 = pl.pallas_call(
        _make_smooth_l1_kernel(beta, compute_dtype),
        out_shape=jax.ShapeDtypeStruct((rows, _LANES), dtype),
        grid=(grid_rows,),
        in_specs=[
            pl.BlockSpec((tile_rows, _LANES), lambda i: (i, 0)),
            pl.BlockSpec((tile_rows, _LANES), lambda i: (i, 0)),
        ],
        out_specs=pl.BlockSpec((tile_rows, _LANES), lambda i: (i, 0)),
        compiler_params=pltpu.CompilerParams(
            dimension_semantics=("parallel",)),
        cost_estimate=cost,
    )(p2, t2)

    if lane_pad:
        return out2.reshape(-1)[:n].reshape(orig_shape)
    return out2.reshape(orig_shape)  # aligned path: no slice, no copy


def _reference(pred, target, beta=0.11):
    x = jnp.abs(pred - target)
    return jnp.where(x >= beta, x - 0.5 * beta, 0.5 * x * x / beta)


if __name__ == "__main__":
    key = jax.random.PRNGKey(0)
    k1, k2 = jax.random.split(key)
    shape = (2, 4, 16, 16)  # NCHW, consistent with the PyTorch module usage
    pred = jax.random.normal(k1, shape, dtype=jnp.float32)
    target = jax.random.normal(k2, shape, dtype=jnp.float32)

    out = smooth_l1_loss(pred, target, beta=0.11)
    out = jax.block_until_ready(out)

    ref = _reference(pred, target, beta=0.11)
    assert out.shape == shape and out.dtype == pred.dtype
    assert jnp.allclose(out, ref, atol=1e-6, rtol=1e-6)
    print("KERNEL_OK")
</pallas_src>

<mosaic_0001>
module attributes {stable_mosaic.version = 11 : i64} {
  func.func @kernel(%arg0: i32, %arg1: memref<16x128xf32, #tpu.memory_space<vmem>>, %arg2: memref<16x128xf32, #tpu.memory_space<vmem>>, %arg3: memref<16x128xf32, #tpu.memory_space<vmem>>) attributes {dimension_semantics = [#tpu.dimension_semantics<parallel>], iteration_bounds = array<i64: 1>, scalar_prefetch = 0 : i64, scratch_operands = 0 : i64, tpu.core_type = #tpu.core_type<tc>, window_params = [{transform_indices = @transform_0, window_bounds = array<i64: 16, 128>}, {transform_indices = @transform_1, window_bounds = array<i64: 16, 128>}, {transform_indices = @transform_2, window_bounds = array<i64: 16, 128>}]} {
    %c0 = arith.constant 0 : index
    %c0_0 = arith.constant 0 : index
    %0 = vector.load %arg1[%c0, %c0_0] : memref<16x128xf32, #tpu.memory_space<vmem>>, vector<16x128xf32>
    %c0_1 = arith.constant 0 : index
    %c0_2 = arith.constant 0 : index
    %1 = vector.load %arg2[%c0_1, %c0_2] : memref<16x128xf32, #tpu.memory_space<vmem>>, vector<16x128xf32>
    %2 = arith.subf %0, %1 : vector<16x128xf32>
    %3 = math.absf %2 : vector<16x128xf32>
    %cst = arith.constant 5.500000e-02 : f32
    %4 = vector.broadcast %cst : f32 to vector<16x128xf32>
    %5 = arith.subf %3, %4 : vector<16x128xf32>
    %cst_3 = arith.constant 4.5454545 : f32
    %6 = vector.broadcast %cst_3 : f32 to vector<16x128xf32>
    %7 = arith.mulf %3, %6 : vector<16x128xf32>
    %8 = arith.mulf %7, %3 : vector<16x128xf32>
    %cst_4 = arith.constant 1.100000e-01 : f32
    %9 = vector.broadcast %cst_4 : f32 to vector<16x128xf32>
    %10 = arith.cmpf oge, %3, %9 : vector<16x128xf32>
    %11 = arith.select %10, %5, %8 : vector<16x128xi1>, vector<16x128xf32>
    %c0_5 = arith.constant 0 : index
    %c0_6 = arith.constant 0 : index
    %12 = vector.load %arg3[%c0_5, %c0_6] : memref<16x128xf32, #tpu.memory_space<vmem>>, vector<16x128xf32>
    tpu.vector_store %arg3[%c0_5, %c0_6], %11 {strides = array<i32>} : memref<16x128xf32, #tpu.memory_space<vmem>>, vector<16x128xf32>,
    return
  }
  func.func @transform_0(%arg0: i32) -> (i32, i32) {
    %c0_i32 = arith.constant 0 : i32
    %c0_i32_0 = arith.constant 0 : i32
    return %arg0, %c0_i32 : i32, i32
  }
  func.func @transform_1(%arg0: i32) -> (i32, i32) {
    %c0_i32 = arith.constant 0 : i32
    %c0_i32_0 = arith.constant 0 : i32
    return %arg0, %c0_i32 : i32, i32
  }
  func.func @transform_2(%arg0: i32) -> (i32, i32) {
    %c0_i32 = arith.constant 0 : i32
    %c0_i32_0 = arith.constant 0 : i32
    return %arg0, %c0_i32 : i32, i32
  }
}

</mosaic_0001>

<bundles_post_ra>
// kernel: tpu_custom_call.1
= control target key start
LH: loop header
LB: loop body
LE: loop exit
PB: predicated region body
PF: predicated region fallthrough
CT: control target
= control target key end

     0   :  { %7 = vsyncpa [#allocation3], 0  ;;  %s189_s0 = inlined_call_operand.hbm [shape: f32[16,128], index: 0, kind: input, shape index: {}]   ;;  %s190_s1 = inlined_call_operand.hbm [shape: f32[16,128], index: 1, kind: input, shape index: {}]   ;;  %s191_s2 = inlined_call_operand.hbm [shape: f32[16,128], index: 2, kind: output, shape index: {}]  }
   0x1   :  { %8 = vsyncpa [#allocation6], 0 }
   0x2   :  { %9 = vsyncpa [#allocation4], 0  ;;  %s151_s9 = smov [#allocation2]  }
   0x3   :  { %s15_s10 = sshll.u32 %s151_s9, 4  ;;  %s16_s10 = int_to_ptr.vmem [resolvable:$true] %s15_s10 }
   0x4   :  { %s93_s11 = scalar_lea.vmem %s16_s10, 256  ;;  %p98_p1 = scmp.lt.s32.totalorder %s16_s10, %s16_s10 }
   0x5   :  { %p94_p0 = scmp.ne.s32.totalorder %s16_s10, %s93_s11  ;;  %p99_p2 = scmp.lt.s32.totalorder %s93_s11, %s93_s11 }
   0x7   :  { %p100_p3 = por %p99_p2, %p98_p1 }
   0x9   :  { %p101_p4 = pnand %p100_p3, %p94_p0 }
   0xb   :  { %104 = shalt.err (!%p101_p4)
}
   0xc   :  { %s152_s12 = smov 128   ;;  %s153_s13 = smov 8  }
   0xd   :  { %21 = dma.hbm_to_vmem [thread:$0]  %s189_s0, 256, %s16_s10, [#allocation3], %s152_s12, %s152_s12, %s153_s13  }
   0xe   :  { %s154_s16 = smov [#allocation5]  }
   0xf   :  { %s27_s17 = sshll.u32 %s154_s16, 4  ;;  %s28_s17 = int_to_ptr.vmem [resolvable:$true] %s27_s17 }
  0x10   :  { %s113_s18 = scalar_lea.vmem %s28_s17, 256  ;;  %p118_p6 = scmp.lt.s32.totalorder %s28_s17, %s28_s17 }
  0x11   :  { %p114_p5 = scmp.ne.s32.totalorder %s28_s17, %s113_s18  ;;  %p119_p7 = scmp.lt.s32.totalorder %s113_s18, %s113_s18 }
  0x13   :  { %p120_p8 = por %p119_p7, %p118_p6 }
  0x15   :  { %p121_p9 = pnand %p120_p8, %p114_p5 }
  0x17   :  { %124 = shalt.err (!%p121_p9)
}
  0x18   :  { %33 = dma.hbm_to_vmem [thread:$0]  %s190_s1, 256, %s28_s17, [#allocation6], %s152_s12, %s152_s12, %s153_s13  }
  0x19   :  { %145 = dma.done.wait [#allocation3], 256  }
  0x1a   :  { %146 = vsyncadd [#allocation3], 4294967040 }
  0x1b   :  { %147 = dma.done.wait [#allocation6], 256  }
  0x1c   :  { %148 = vsyncadd [#allocation6], 4294967040  ;;  %v40_v0 = vld [vmem:[#allocation2] sm:$0xff]  ;;  %v42_v1 = vld [vmem:[#allocation5] sm:$0xff]  ;;  %s155_s0 = smov [#allocation7]  }
  0x1d   :  { %v41_v2 = vld [vmem:[#allocation2 + $0x8] sm:$0xff]  ;;  %v44_v3 = vsub.f32 %v40_v0, %v42_v1  ;;  %v43_v4 = vld [vmem:[#allocation5 + $0x8] sm:$0xff]  ;;  %s65_s21 = sshll.u32 %s155_s0, 4  ;;  %s66_s21 = int_to_ptr.vmem [resolvable:$true] %s65_s21 }
  0x1e   :  { %v45_v5 = vsub.f32 %v41_v2, %v43_v4  ;;  %s125_s1 = scalar_lea.vmem %s66_s21, 256  ;;  %p130_p11 = scmp.lt.s32.totalorder %s66_s21, %s66_s21 }
  0x1f   :  { %v46_v6 = vand.u32 2147483647, %v44_v3  ;;  %p126_p10 = scmp.ne.s32.totalorder %s66_s21, %s125_s1  ;;  %p131_p12 = scmp.lt.s32.totalorder %s125_s1, %s125_s1 }
  0x20   :  { %v47_v7 = vand.u32 2147483647, %v45_v5 }
  0x21   :  { %v78_v8 = vadd.f32 -0.055, %v46_v6  ;;  %v50_v9 = vmul.f32 4.5454545, %v46_v6  ;;  %vm54_vm0 = vcmp.ge.f32.partialorder %v46_v6, 0.11  ;;  %p132_p13 = por %p131_p12, %p130_p11 }
  0x22   :  { %v79_v10 = vadd.f32 -0.055, %v47_v7  ;;  %v51_v11 = vmul.f32 4.5454545, %v47_v7  ;;  %vm55_vm1 = vcmp.ge.f32.partialorder %v47_v7, 0.11 }
  0x23   :  { %v52_v12 = vmul.f32 %v50_v9, %v46_v6  ;;  %p133_p0 = pnand %p132_p13, %p126_p10 }
  0x24   :  { %v53_v13 = vmul.f32 %v51_v11, %v47_v7 }
  0x25   :  { %v56_v14 = vsel %vm54_vm0, %v78_v8, %v52_v12 }
  0x26   :  { %58 = vst [vmem:[#allocation7] sm:$0xff] %v56_v14  ;;  %v57_v15 = vsel %vm55_vm1, %v79_v10, %v53_v13 }
  0x27   :  { %59 = vst [vmem:[#allocation7 + $0x8] sm:$0xff] %v57_v15 }
  0x28   :  { %136 = shalt.err (!%p133_p0)
}
  0x29   :  { %71 = dma.vmem_to_hbm [thread:$0]  %s66_s21, 256, %s191_s2, [#allocation4], %s152_s12, %s152_s12, %s153_s13  }
  0x2a   :  { %149 = dma.done.wait [#allocation4], 256  }
  0x2b   :  { %150 = vsyncadd [#allocation4], 4294967040 }
  0x2c   :  { %75 = vsyncpa [#allocation3], 1 }
  0x2d   :  { %76 = vsyncpa [#allocation6], 1 }
  0x2e   :  { %77 = vsyncpa [#allocation4], 1 }

</bundles_post_ra>
